<compile_context>
chip_gen: v5e
topology: v5e:2x2
jax: 0.10.0
libtpu: 0.0.40
codegen_flags: <defaults>
</compile_context>

<pallas_src>
import functools
import math

import numpy as np
import jax
import jax.numpy as jnp
from jax.experimental import pallas as pl
from jax.experimental.pallas import tpu as pltpu


_LN_EPS = 1e-5
# Large finite negative instead of -inf: identical softmax result for
# n_wins >= 1, but avoids NaN propagation if a row were ever fully masked.
_NEG_BIG = float(jnp.finfo(jnp.float32).min)

_ROW_TILE = 8  # toy-scale; production: 512 (v7x/v5e) or 1024-2048 (v6e)


# ---------------------------------------------------------------------------
# Kernels
# ---------------------------------------------------------------------------

def _linear_kernel(x_ref, w_ref, b_ref, o_ref, *, activation):
    # x: (tm, K), w: (K, N), b: (1, N)  ->  o: (tm, N)
    acc = jnp.dot(x_ref[...], w_ref[...], preferred_element_type=jnp.float32)
    acc = acc + b_ref[...]
    if activation == "relu":
        acc = jnp.maximum(acc, 0.0)
    o_ref[...] = acc.astype(o_ref.dtype)


def _ln_math(h, g, b):
    mu = jnp.mean(h, axis=-1, keepdims=True)
    c = h - mu
    var = jnp.mean(c * c, axis=-1, keepdims=True)
    return c * jax.lax.rsqrt(var + _LN_EPS) * g + b


def _layernorm_kernel(x_ref, g_ref, b_ref, o_ref):
    o_ref[...] = _ln_math(x_ref[...], g_ref[...], b_ref[...]).astype(o_ref.dtype)


def _add_layernorm_kernel(x_ref, y_ref, g_ref, b_ref, o_ref):
    # fused residual-add + LayerNorm
    h = x_ref[...] + y_ref[...]
    o_ref[...] = _ln_math(h, g_ref[...], b_ref[...]).astype(o_ref.dtype)


def _mha_kernel(nwins_ref, q_ref, k_ref, v_ref, o_ref, *, scale):
    # One (batch, head) pair per grid step.
    # nwins_ref: SMEM (B,) int32 (scalar-prefetched)
    # q/k/v/o refs: (1, 1, T, Dh)
    b = pl.program_id(0)
    q = q_ref[0, 0]                                            # (T, Dh)
    k = k_ref[0, 0]                                            # (T, Dh)
    v = v_ref[0, 0]                                            # (T, Dh)

    # scores = q @ k^T * scale  (contract on Dh; no explicit transpose)
    s = jax.lax.dot_general(q, k, (((1,), (1,)), ((), ())),
                            preferred_element_type=jnp.float32) * scale  # (T, T)

    # key-padding mask: keys j >= n_wins[b].  Tiny (1, T) iota broadcast over
    # query rows inside the select (no full-size mask temporaries).
    n_valid = nwins_ref[b]
    col = jax.lax.broadcasted_iota(jnp.int32, (1, s.shape[1]), 1)
    s = jnp.where(col < n_valid, s, _NEG_BIG)

    # numerically-stable softmax over keys
    m = jnp.max(s, axis=-1, keepdims=True)
    p = jnp.exp(s - m)
    p = p / jnp.sum(p, axis=-1, keepdims=True)

    o = jnp.dot(p, v, preferred_element_type=jnp.float32)      # (T, Dh)
    o_ref[0, 0] = o.astype(o_ref.dtype)


# ---------------------------------------------------------------------------
# Wrappers (pallas_call plumbing)
# ---------------------------------------------------------------------------

def _row_tile(m):
    return _ROW_TILE if m % _ROW_TILE == 0 else m


def _linear(x2d, weight, bias, activation=None):
    """x2d: (M, K) f32; weight: (N, K) PyTorch layout; bias: (N,). -> (M, N)."""
    M, K = x2d.shape
    N = weight.shape[0]
    tm = _row_tile(M)
    w_t = jnp.transpose(weight).astype(jnp.float32)     # (K, N)
    b2d = bias.reshape(1, N).astype(jnp.float32)
    return pl.pallas_call(
        functools.partial(_linear_kernel, activation=activation),
        out_shape=jax.ShapeDtypeStruct((M, N), jnp.float32),
        grid=(M // tm,),
        in_specs=[
            pl.BlockSpec((tm, K), lambda i: (i, 0)),
            pl.BlockSpec((K, N), lambda i: (0, 0)),      # weight resident
            pl.BlockSpec((1, N), lambda i: (0, 0)),      # bias resident
        ],
        out_specs=pl.BlockSpec((tm, N), lambda i: (i, 0)),
        compiler_params=pltpu.CompilerParams(dimension_semantics=("parallel",)),
    )(x2d, w_t, b2d)


def _layernorm(x2d, gamma, beta):
    M, D = x2d.shape
    tm = _row_tile(M)
    return pl.pallas_call(
        _layernorm_kernel,
        out_shape=jax.ShapeDtypeStruct((M, D), jnp.float32),
        grid=(M // tm,),
        in_specs=[
            pl.BlockSpec((tm, D), lambda i: (i, 0)),
            pl.BlockSpec((1, D), lambda i: (0, 0)),
            pl.BlockSpec((1, D), lambda i: (0, 0)),
        ],
        out_specs=pl.BlockSpec((tm, D), lambda i: (i, 0)),
        compiler_params=pltpu.CompilerParams(dimension_semantics=("parallel",)),
    )(x2d, gamma, beta)


def _add_layernorm(x2d, y2d, gamma, beta):
    M, D = x2d.shape
    tm = _row_tile(M)
    return pl.pallas_call(
        _add_layernorm_kernel,
        out_shape=jax.ShapeDtypeStruct((M, D), jnp.float32),
        grid=(M // tm,),
        in_specs=[
            pl.BlockSpec((tm, D), lambda i: (i, 0)),
            pl.BlockSpec((tm, D), lambda i: (i, 0)),
            pl.BlockSpec((1, D), lambda i: (0, 0)),
            pl.BlockSpec((1, D), lambda i: (0, 0)),
        ],
        out_specs=pl.BlockSpec((tm, D), lambda i: (i, 0)),
        compiler_params=pltpu.CompilerParams(dimension_semantics=("parallel",)),
    )(x2d, y2d, gamma, beta)


def _mha(q, k, v, n_wins):
    """q/k/v: (B, H, T, Dh) f32; n_wins: (B,) int.  Returns (B, H, T, Dh)."""
    B, H, T, Dh = q.shape
    scale = 1.0 / math.sqrt(Dh)
    nw = n_wins.astype(jnp.int32)
    spec = pl.BlockSpec((1, 1, T, Dh), lambda b, h, nw_ref: (b, h, 0, 0))
    return pl.pallas_call(
        functools.partial(_mha_kernel, scale=scale),
        out_shape=jax.ShapeDtypeStruct((B, H, T, Dh), jnp.float32),
        grid_spec=pltpu.PrefetchScalarGridSpec(
            num_scalar_prefetch=1,            # n_wins -> SMEM
            grid=(B, H),
            in_specs=[spec, spec, spec],
            out_specs=spec,
        ),
        compiler_params=pltpu.CompilerParams(
            dimension_semantics=("parallel", "parallel")),
    )(nw, q, k, v)


# ---------------------------------------------------------------------------
# TimeDependency (td='self_att') forward
# ---------------------------------------------------------------------------

def time_dependency_forward(x, n_wins, params):
    """x: (B, T, input_size) f32; n_wins: (B,) int.
    Returns ((B, T, d_model) f32, n_wins)."""
    B, T, _ = x.shape
    d = params["d_model"]
    H = params["nhead"]
    Dh = d // H

    # input projection + module-level LayerNorm (pos_encoder = Identity)
    h = _linear(x.reshape(B * T, -1).astype(jnp.float32),
                params["linear_w"], params["linear_b"])
    h = _layernorm(h, params["norm1_g"], params["norm1_b"])

    for lp in params["layers"]:
        # --- multi-head self-attention with key_padding_mask from n_wins ---
        qkv = _linear(h, lp["in_proj_w"], lp["in_proj_b"])      # (B*T, 3d)
        qkv = qkv.reshape(B, T, 3, H, Dh)
        q = jnp.transpose(qkv[:, :, 0], (0, 2, 1, 3))           # (B, H, T, Dh)
        k = jnp.transpose(qkv[:, :, 1], (0, 2, 1, 3))
        v = jnp.transpose(qkv[:, :, 2], (0, 2, 1, 3))
        ctx = _mha(q, k, v, n_wins)                             # (B, H, T, Dh)
        ctx = jnp.transpose(ctx, (0, 2, 1, 3)).reshape(B * T, d)
        attn = _linear(ctx, lp["out_proj_w"], lp["out_proj_b"])
        h = _add_layernorm(h, attn, lp["ln1_g"], lp["ln1_b"])

        # --- feed-forward ---
        f = _linear(h, lp["lin1_w"], lp["lin1_b"], activation="relu")
        f = _linear(f, lp["lin2_w"], lp["lin2_b"])
        h = _add_layernorm(h, f, lp["ln2_g"], lp["ln2_b"])

    return h.reshape(B, T, d), n_wins


# ---------------------------------------------------------------------------
# Params + pure-JAX reference
# ---------------------------------------------------------------------------

def init_params(key, input_size, d_model, nhead, sa_h, num_layers):
    def xavier(k, out_f, in_f):
        bound = math.sqrt(6.0 / (in_f + out_f))
        return jax.random.uniform(k, (out_f, in_f), jnp.float32, -bound, bound)

    keys = iter(jax.random.split(key, 4 + num_layers * 8))
    params = {
        "d_model": d_model,
        "nhead": nhead,
        "linear_w": xavier(next(keys), d_model, input_size),
        "linear_b": jax.random.uniform(next(keys), (d_model,), jnp.float32, -0.1, 0.1),
        "norm1_g": jnp.ones((1, d_model), jnp.float32),
        "norm1_b": jnp.zeros((1, d_model), jnp.float32),
        "layers": [],
    }
    for _ in range(num_layers):
        params["layers"].append({
            "in_proj_w": xavier(next(keys), 3 * d_model, d_model),
            "in_proj_b": jax.random.uniform(next(keys), (3 * d_model,), jnp.float32, -0.1, 0.1),
            "out_proj_w": xavier(next(keys), d_model, d_model),
            "out_proj_b": jax.random.uniform(next(keys), (d_model,), jnp.float32, -0.1, 0.1),
            "lin1_w": xavier(next(keys), sa_h, d_model),
            "lin1_b": jax.random.uniform(next(keys), (sa_h,), jnp.float32, -0.1, 0.1),
            "lin2_w": xavier(next(keys), d_model, sa_h),
            "lin2_b": jax.random.uniform(next(keys), (d_model,), jnp.float32, -0.1, 0.1),
            "ln1_g": jnp.ones((1, d_model), jnp.float32),
            "ln1_b": jnp.zeros((1, d_model), jnp.float32),
            "ln2_g": jnp.ones((1, d_model), jnp.float32),
            "ln2_b": jnp.zeros((1, d_model), jnp.float32),
        })
    return params


def reference_forward(x, n_wins, params):
    B, T, _ = x.shape
    d = params["d_model"]
    H = params["nhead"]
    Dh = d // H
    hp = jax.lax.Precision.HIGHEST

    def lin(h, w, b):
        return jnp.dot(h, w.T, precision=hp) + b

    def ln(h, g, b):
        mu = jnp.mean(h, axis=-1, keepdims=True)
        c = h - mu
        var = jnp.mean(c * c, axis=-1, keepdims=True)
        return c * jax.lax.rsqrt(var + _LN_EPS) * g + b

    h = lin(x.reshape(B * T, -1), params["linear_w"], params["linear_b"])
    h = ln(h, params["norm1_g"], params["norm1_b"])
    valid = jnp.arange(T)[None, :] < n_wins[:, None]          # (B, T)
    scale = 1.0 / math.sqrt(Dh)
    for lp in params["layers"]:
        qkv = lin(h, lp["in_proj_w"], lp["in_proj_b"]).reshape(B, T, 3, H, Dh)
        q = jnp.transpose(qkv[:, :, 0], (0, 2, 1, 3))
        k = jnp.transpose(qkv[:, :, 1], (0, 2, 1, 3))
        v = jnp.transpose(qkv[:, :, 2], (0, 2, 1, 3))
        s = jnp.einsum("bhqd,bhkd->bhqk", q, k, precision=hp) * scale
        s = jnp.where(valid[:, None, None, :], s, _NEG_BIG)
        m = jnp.max(s, axis=-1, keepdims=True)
        p = jnp.exp(s - m)
        p = p / jnp.sum(p, axis=-1, keepdims=True)
        ctx = jnp.einsum("bhqk,bhkd->bhqd", p, v, precision=hp)
        ctx = jnp.transpose(ctx, (0, 2, 1, 3)).reshape(B * T, d)
        attn = lin(ctx, lp["out_proj_w"], lp["out_proj_b"])
        h = ln(h + attn, lp["ln1_g"], lp["ln1_b"])
        f = jnp.maximum(lin(h, lp["lin1_w"], lp["lin1_b"]), 0.0)
        f = lin(f, lp["lin2_w"], lp["lin2_b"])
        h = ln(h + f, lp["ln2_g"], lp["ln2_b"])
    return h.reshape(B, T, d)


if __name__ == "__main__":
    # Small shapes consistent with TimeDependency(td='self_att'):
    # (batch=2, seq=8, input_size=32) -> d_model=64, nhead=4, sa_h=128, 2 layers
    B, T = 2, 8
    INPUT, D_MODEL, NHEAD, SA_H, NUM_LAYERS = 32, 64, 4, 128, 2

    key = jax.random.PRNGKey(0)
    kx, kp = jax.random.split(key)
    x = jax.random.normal(kx, (B, T, INPUT), dtype=jnp.float32)
    n_wins = jnp.array([8, 5], dtype=jnp.int32)   # valid windows per batch item

    params = init_params(kp, INPUT, D_MODEL, NHEAD, SA_H, NUM_LAYERS)

    out, out_nwins = time_dependency_forward(x, n_wins, params)
    out = jax.block_until_ready(out)

    ref = reference_forward(x, n_wins, params)
    assert out.shape == (B, T, D_MODEL)
    np.testing.assert_allclose(np.asarray(out), np.asarray(ref),
                               rtol=1e-2, atol=1e-2)
    print("KERNEL_OK")
</pallas_src>

<mosaic_0001>
module attributes {stable_mosaic.version = 11 : i64} {
  func.func @_linear_kernel(%arg0: i32, %arg1: memref<8x32xf32, #tpu.memory_space<vmem>>, %arg2: memref<32x64xf32, #tpu.memory_space<vmem>>, %arg3: memref<1x64xf32, #tpu.memory_space<vmem>>, %arg4: memref<8x64xf32, #tpu.memory_space<vmem>>) attributes {dimension_semantics = [#tpu.dimension_semantics<parallel>], iteration_bounds = array<i64: 2>, scalar_prefetch = 0 : i64, scratch_operands = 0 : i64, tpu.core_type = #tpu.core_type<tc>, window_params = [{transform_indices = @transform_0, window_bounds = array<i64: 8, 32>}, {pipeline_mode = #tpu.pipeline_mode<synchronous>, transform_indices = @transform_1, window_bounds = array<i64: 32, 64>}, {pipeline_mode = #tpu.pipeline_mode<synchronous>, transform_indices = @transform_2, window_bounds = array<i64: 1, 64>}, {transform_indices = @transform_3, window_bounds = array<i64: 8, 64>}]} {
    %c0 = arith.constant 0 : index
    %c0_0 = arith.constant 0 : index
    %0 = vector.load %arg1[%c0, %c0_0] : memref<8x32xf32, #tpu.memory_space<vmem>>, vector<8x32xf32>
    %c0_1 = arith.constant 0 : index
    %c0_2 = arith.constant 0 : index
    %1 = vector.load %arg2[%c0_1, %c0_2] : memref<32x64xf32, #tpu.memory_space<vmem>>, vector<32x64xf32>
    %cst = arith.constant dense<0.000000e+00> : vector<8x64xf32>
    %2 = tpu.matmul %0, %1, %cst {dimension_numbers = #tpu.dot_dimension_numbers<[1], [0], [0], [1], [0, 0, 1, 1], [], []>} : vector<8x32xf32>, vector<32x64xf32>, vector<8x64xf32> -> vector<8x64xf32>
    %c0_3 = arith.constant 0 : index
    %c0_4 = arith.constant 0 : index
    %3 = vector.load %arg3[%c0_3, %c0_4] : memref<1x64xf32, #tpu.memory_space<vmem>>, vector<1x64xf32>
    %4 = vector.broadcast %3 : vector<1x64xf32> to vector<8x64xf32>
    %5 = arith.addf %2, %4 : vector<8x64xf32>
    %c0_5 = arith.constant 0 : index
    %c0_6 = arith.constant 0 : index
    %6 = vector.load %arg4[%c0_5, %c0_6] : memref<8x64xf32, #tpu.memory_space<vmem>>, vector<8x64xf32>
    tpu.vector_store %arg4[%c0_5, %c0_6], %5 {strides = array<i32>} : memref<8x64xf32, #tpu.memory_space<vmem>>, vector<8x64xf32>,
    return
  }
  func.func @transform_0(%arg0: i32) -> (i32, i32) {
    %c0_i32 = arith.constant 0 : i32
    %c0_i32_0 = arith.constant 0 : i32
    return %arg0, %c0_i32 : i32, i32
  }
  func.func @transform_1(%arg0: i32) -> (i32, i32) {
    %c0_i32 = arith.constant 0 : i32
    %c0_i32_0 = arith.constant 0 : i32
    %c0_i32_1 = arith.constant 0 : i32
    return %c0_i32, %c0_i32_0 : i32, i32
  }
  func.func @transform_2(%arg0: i32) -> (i32, i32) {
    %c0_i32 = arith.constant 0 : i32
    %c0_i32_0 = arith.constant 0 : i32
    %c0_i32_1 = arith.constant 0 : i32
    return %c0_i32, %c0_i32_0 : i32, i32
  }
  func.func @transform_3(%arg0: i32) -> (i32, i32) {
    %c0_i32 = arith.constant 0 : i32
    %c0_i32_0 = arith.constant 0 : i32
    return %arg0, %c0_i32 : i32, i32
  }
}

</mosaic_0001>

<bundles_post_ra>
// kernel: tpu_custom_call.1
= control target key start
LH: loop header
LB: loop body
LE: loop exit
PB: predicated region body
PF: predicated region fallthrough
CT: control target
= control target key end

     0   :  { %8 = vsyncpa [#allocation3], 0  ;;  %s705_s0 = inlined_call_operand.hbm [shape: f32[16,32], index: 0, kind: input, shape index: {}]   ;;  %s706_s1 = inlined_call_operand.hbm [shape: f32[32,64], index: 1, kind: input, shape index: {}]   ;;  %s707_s2 = inlined_call_operand.vmem [shape: f32[1,64], index: 2, kind: input, shape index: {}]   ;;  %s708_s3 = inlined_call_operand.hbm [shape: f32[16,64], index: 3, kind: output, shape index: {}]  }
   0x1   :  { %10 = vsyncpa [#allocation3 + $0x1], 0 }
   0x2   :  { %11 = vsyncpa [#allocation6], 0 }
   0x3   :  { %12 = vsyncpa [#allocation4], 0 }
   0x4   :  { %14 = vsyncpa [#allocation4 + $0x1], 0  ;;  %s566_s12 = smov 0   ;;  %s568_s13 = smov 0  }
   0x5   :  { %s570_s14 = smov 0   ;;  %s572_s15 = smov 0  }
   0x6 LB: > { %s130_s18 = sshll.u32 %s706_s1, 4  ;;  %s590_s19 = sadd.s32 4294967295, %s541_s15   ;;  %s541_s15 = sphi %s572_s15, %s718_s15   ;;  %s537_s14 = sphi %s570_s14, %s717_s14   ;;  %s533_s13 = sphi %s568_s13, %s716_s13   ;;  %s529_s12 = sphi %s566_s12, %s715_s12   ;;  %s131_s18 = int_to_ptr.hbm [resolvable:$true] %s130_s18 }
   0x7   : > { %p337_p0 = scmp.ge.s32.totalorder %s541_s15, 1  ;;  %p41_p1 = scmp.eq.s32.totalorder %s590_s19, 0 }
   0x8   : > { %p119_p2 = scmp.lt.s32.totalorder %s541_s15, 3  ;;  %s543_s21 = smov [#allocation5]  }
   0x9   : > { %s132_s22 = sshll.u32 %s543_s21, 4  ;;  %s544_s23 = smov 128   ;;  %s133_s22 = int_to_ptr.vmem [resolvable:$true] %s132_s22 }
   0xa   : > { %p595_p3 = pnand %p337_p0, %p119_p2  ;;  %s545_s24 = smov 8  }
   0xb   : > { %s336_s25 = sadd.s32 4294967294, %s541_s15   ;;  %s606_s26 = sadd.s32 1, %s541_s15  }
   0xc   : > { %p359_p4 = pneg %p595_p3  ;;  %s27_s27 = sadd.s32 1, %s537_s14 }
   0xd   : > { %s24_s28 = ssub.s32 %s541_s15, %s606_s26  ;;  %p34_p7 = scmp.ne.s32.totalorder %s537_s14, %s533_s13 }
   0xe   : > { %p360_p6 = pnand %p359_p4, %p41_p1  ;;  %p25_p8 = scmp.eq.s32.totalorder %s24_s28, 0 }
   0xf   : > { %p35_p9 = scmp.eq.s32.totalorder %s541_s15, 0  ;;  %p40_p10 = scmp.ne.s32.totalorder %s533_s13, %s529_s12 }
  0x10   : > { %362 = dma.hbm_to_vmem [thread:$0]  (!%p360_p6), %s131_s18, 512, %s133_s22, [#allocation6], %s544_s23, %s544_s23, %s545_s24  }
  0x11   : > { %p106_p11 = scmp.eq.s32.totalorder %s590_s19, 1  ;;  %p622_p12 = por %p41_p1, %p40_p10 }
  0x12   : > { %s618_s29 = scalar_select %p25_p8, %s537_s14, %s27_s27  }
  0x13   : > { %p626_p13 = por %p106_p11, %p34_p7  ;;  %p112_p0 = scmp.eq.s32.totalorder %s336_s25, 1 }
  0x14   : > { %p36_p2 = por %p35_p9, %p34_p7  ;;  %s149_s5 = sand.u32 1, %s537_s14  }
  0x15   : > { %p631_p4 = por %p112_p0, %p40_p10  ;;  %p372_p6 = scmp.lt.s32.totalorder %s541_s15, 2 }
  0x16   : > { %s340_s7 = sshll.u32 %s149_s5, 3  ;;  %s341_s8 = sshll.u32 %s541_s15, 3 }
  0x17   : > { %s157_s11 = scalar_lea.hbm %s705_s0, %s341_s8  ;;  %s153_s17 = scalar_lea.vmem [#allocation2], %s340_s7 }
  0x18   : > { %s159_s16 = sshll.u32 %s157_s11, 4  ;;  %s161_s18 = sshll.u32 %s153_s17, 4  ;;  %s160_s16 = int_to_ptr.hbm [resolvable:$true] %s159_s16  ;;  %s162_s18 = int_to_ptr.vmem [resolvable:$true] %s161_s18 }
  0x19   : > { %p640_p8 = pnand %p372_p6, %p36_p2  ;;  %s150_s22 = scalar_lea.sflag [#allocation3], %s149_s5 }
  0x1a   : > { %s441_s23 = sshra.s32 %s160_s16, 4  ;;  %s448_s28 = scalar_lea.hbm %s705_s0, 16  ;;  %s442_s23 = int_to_ptr.hbm [resolvable:$true] %s441_s23 }
  0x1b   : > { %s443_s24 = scalar_lea.hbm %s442_s23, 8  ;;  %p445_p9 = pneg %p640_p8 }
  0x1c   : > { %p444_p7 = scmp.ne.s32.totalorder %s442_s23, %s443_s24  ;;  %p449_p0 = scmp.lt.s32.totalorder %s442_s23, %s705_s0 }
  0x1d   : > { %p450_p2 = scmp.lt.s32.totalorder %s448_s28, %s443_s24 }
  0x1e   : > { %p446_p10 = pnand %p445_p9, %p444_p7 }
  0x1f   : > { %p451_p6 = por %p450_p2, %p449_p0 }
  0x20   : > { %p447_p11 = pneg %p446_p10 }
  0x22   : > { %p452_p5 = pnand %p451_p6, %p447_p11 }
  0x24   : > { %455 = shalt.err (!%p452_p5)
}
  0x25   : > { %366 = dma.hbm_to_vmem [thread:$0]  (!%p640_p8), %s160_s16, 128, %s162_s18, %s150_s22  }
  0x26   : > { %170 = sbr.rel (%p595_p3) target bundleno = 185 (0xb9), region = 32  ;;  %s657_s5 = sand.u32 (!%p595_p3), 1, %s533_s13  }
  0x27   : > { %s343_s9 = sshll.u32 (!%p595_p3), %s657_s5, 3  ;;  %s173_s10 = scalar_lea.sflag (!%p595_p3), [#allocation3], %s657_s5 }
  0x28   : > { %s176_s11 = scalar_lea.vmem (!%p595_p3), [#allocation2], %s343_s9 }
  0x2b   : > { %516 = dma.done.wait (%p622_p12), %s173_s10, 128  }
  0x2c   : > { %518 = vsyncadd (%p622_p12), %s173_s10, 4294967168 }
  0x2d   : > { %520 = dma.done.wait (%p41_p1), [#allocation6], 512  }
  0x2e   : > { %522 = vsyncadd (%p41_p1), [#allocation6], 4294966784  ;;  %v209_v0 = vld [vmem:[#allocation5 + $0x18] sm:$0xff]  ;;  %v208_v1 = vld [vmem:[#allocation5 + $0x10] sm:$0xff]  ;;  %vm214_vm0 = vcmask 261120   ;;  %s348_s20 = sshll.u32 %s590_s19, 3 }
  0x2f   : > { %230 = vmatpush.msra.mxu0 %v209_v0  ;;  %v207_v2 = vld [vmem:[#allocation5 + $0x8] sm:$0xff]  ;;  %v206_v3 = vld [vmem:[#allocation5] sm:$0xff]  ;;  %v205_v4 = vld [vmem:[%s176_s11] sm:$0xff]  ;;  %s251_s17 = scalar_lea.hbm %s708_s3, %s348_s20  ;;  %s204_s22 = scalar_lea.vmem [#allocation7], %s343_s9  ;;  %vm238_vm1 = vcmask 523264  }
  0x30   : > { %v410_v5 = vld [vmem:[%s707_s2] ss:$0 sm:$0xff]  ;;  %s253_s23 = sshll.u32 %s204_s22, 4  ;;  %s255_s24 = sshll.u32 %s251_s17, 4  ;;  %s254_s23 = int_to_ptr.vmem [resolvable:$true] %s253_s23  ;;  %s256_s24 = int_to_ptr.hbm [resolvable:$true] %s255_s24 }
  0x31   : > { %231 = vmatpush.msra.mxu0 %v208_v1  ;;  %s241_s25 = scalar_lea.sflag [#allocation4], %s657_s5  ;;  %s485_s19 = sshra.s32 %s256_s24, 4  ;;  %s486_s19 = int_to_ptr.hbm [resolvable:$true] %s485_s19 }
  0x32   : > { %s487_s27 = scalar_lea.hbm %s486_s19, 8  ;;  %s491_s8 = scalar_lea.hbm %s708_s3, 16 }
  0x33   : > { %232 = vmatpush.msra.mxu0 %v207_v2  ;;  %p488_p1 = scmp.ne.s32.totalorder %s486_s19, %s487_s27  ;;  %p492_p12 = scmp.lt.s32.totalorder %s486_s19, %s708_s3 }
  0x34   : > { %p493_p8 = scmp.lt.s32.totalorder %s491_s8, %s487_s27 }
  0x35   : > { %233 = vmatpush.msra.mxu0 %v206_v3  ;;  %p489_p3 = pnand %p488_p1, %p626_p13 }
  0x36   : > { %346 = vmatmul.msk.f32.vlgmr.msra.gmra.mxu0 %vm214_vm0, %v205_v4  ;;  %p494_p7 = por %p493_p8, %p492_p12 }
  0x37   : > { %p490_p5 = pneg %p489_p3 }
  0x39   : > { %p495_p9 = pnand %p494_p7, %p490_p5 }
  0xb3   : > { %v235_v6 = vpop.f32.mrf.mxu0 }
  0xb4   : > { %v236_v7 = vadd.f32 %v410_v5, %v235_v6 }
  0xb6   : > { %239 = vst.msk [vmem:[%s204_s22] sm:$0xff] %vm238_vm1, %v236_v7 }
  0xb7   : > { %498 = shalt.err (!%p495_p9)
}
  0xb8   : > { %357 = dma.vmem_to_hbm [thread:$0]  (%p626_p13), %s254_s23, 128, %s256_s24, %s241_s25  }
  0xb9 PF: > { %s267_s5 = sand.u32 1, %s529_s12   ;;  %p714_p10 = scmp.ge.s32.totalorder %s541_s15, 2 }
  0xba   : > { %s268_s11 = scalar_lea.sflag [#allocation4], %s267_s5 }
  0xbb   : > { %p368_p11 = pnand %p714_p10, %p631_p4 }
  0xbd   : > { %p369_p0 = pneg %p368_p11 }
  0xbf   : > { %524 = dma.done.wait (%p369_p0), %s268_s11, 128  }
  0xc0   : > { %526 = vsyncadd (%p369_p0), %s268_s11, 4294967168  ;;  %p17_p2 = scmp.ge.s32.totalorder %s606_s26, 4   ;;  %s715_s12 = smov %s533_s13 }
  0xc1   : > { %s716_s13 = smov %s537_s14  ;;  %s717_s14 = smov %s618_s29 }
  0xc2   : > { %s718_s15 = smov %s606_s26  ;;  %19 = sbr.rel (!%p17_p2) target bundleno = 6 (0x6), region = 81 }
  0xc7   :  { %274 = vsyncpa [#allocation3], 1 }
  0xc8   :  { %276 = vsyncpa [#allocation3 + $0x1], 1 }
  0xc9   :  { %277 = vsyncpa [#allocation6], 1 }
  0xca   :  { %278 = vsyncpa [#allocation4], 1 }
  0xcb   :  { %280 = vsyncpa [#allocation4 + $0x1], 1 }

</bundles_post_ra>
